<compile_context>
chip_gen: v5e
topology: v5e:2x2
jax: 0.10.0
libtpu: 0.0.40
codegen_flags: <defaults>
</compile_context>

<pallas_src>
import functools

import jax
import jax.numpy as jnp
from jax.experimental import pallas as pl
from jax.experimental.pallas import tpu as pltpu

LANE = 128
FC_IN = 512     # Linear(512, 40) input dim
FC_OUT = 40     # channel-attention width (== event_c)
FC_PAD = 128    # lane-dense padding of the 40-wide FC dims


def _round_up(x: int, m: int) -> int:
    return -(-x // m) * m


# ---------------------------------------------------------------------------
# Kernel 1: squeeze/excite — att = sigmoid(relu(mean_L(agg) @ W1p) @ W2p)
# Tiled over L (reduction axis) with an f32 accumulator scratch.
# ---------------------------------------------------------------------------
def _fc_kernel(agg_ref, w1_ref, w2_ref, att_ref, acc_ref, *,
               inv_len, seq_len, t_l, need_mask):
    li = pl.program_id(0)

    @pl.when(li == 0)
    def _init():
        acc_ref[...] = jnp.zeros_like(acc_ref)

    x = agg_ref[...].astype(jnp.float32)                       # (B, t_l, 512)
    if need_mask:
        # Ragged last L-block: zero out-of-range rows before summing.
        row = jax.lax.broadcasted_iota(jnp.int32, x.shape, 1) + li * t_l
        x = jnp.where(row < seq_len, x, jnp.float32(0))
    acc_ref[...] += jnp.sum(x, axis=1)                         # (B, 512)

    @pl.when(li == pl.num_programs(0) - 1)
    def _finalize():
        pooled = acc_ref[...] * inv_len                        # mean over L
        h = jnp.dot(pooled, w1_ref[...],
                    preferred_element_type=jnp.float32)        # (B, 128)
        h = jnp.maximum(h, 0.0)
        att = jnp.dot(h, w2_ref[...],
                      preferred_element_type=jnp.float32)      # (B, 128)
        att_ref[...] = jax.nn.sigmoid(att)   # padded lanes (>=40) discarded by wrapper


# ---------------------------------------------------------------------------
# Kernel 2: streaming broadcast multiply over (batch, spatial tiles)
# ---------------------------------------------------------------------------
def _scale_kernel(x_ref, att_ref, o_ref):
    # One vld + one vmul + one vst per vreg; att stays a (1, C, 1) per-sublane
    # scalar broadcast (no materialized (1, C, TILE) broadcast tensor).
    o_ref[...] = x_ref[...] * att_ref[...]


def channel_att(event_40C_feature, aggregrated_event, w1, w2, *,
                tile_hw=8192, seq_tile=1024):
    """event_40C_feature: (B, 40, H, W); aggregrated_event: tuple whose first
    element is (B, L, 512); w1: (40, 512); w2: (40, 40) (torch (out, in))."""
    agg = aggregrated_event[0]
    B, C, H, W = event_40C_feature.shape
    Bl, L, IN = agg.shape
    assert C == FC_OUT and IN == FC_IN and Bl == B

    # --- 1) attention vector (tiny, computed once, not per spatial tile) ---
    # Zero-pad the 40-wide FC dims to 128 lanes so both matmuls are lane-dense.
    # TODO(synk): hoist this weight padding to parameter-prep time if weights
    # are static across calls.
    w1_t = jnp.zeros((FC_IN, FC_PAD), jnp.float32).at[:, :FC_OUT].set(
        w1.T.astype(jnp.float32))
    w2_t = jnp.zeros((FC_PAD, FC_PAD), jnp.float32).at[:FC_OUT, :FC_OUT].set(
        w2.T.astype(jnp.float32))

    if L <= seq_tile:
        t_l, n_l = L, 1                    # single full-extent block
    else:
        t_l = seq_tile                     # multiple of 8 (sublane-aligned)
        n_l = pl.cdiv(L, t_l)
    need_mask = (n_l > 1) and (L % t_l != 0)

    att_full = pl.pallas_call(
        functools.partial(_fc_kernel, inv_len=1.0 / L, seq_len=L,
                          t_l=t_l, need_mask=need_mask),
        out_shape=jax.ShapeDtypeStruct((B, FC_PAD), jnp.float32),
        grid=(n_l,),
        in_specs=[
            pl.BlockSpec((B, t_l, IN), lambda li: (0, li, 0)),
            pl.BlockSpec((FC_IN, FC_PAD), lambda li: (0, 0)),
            pl.BlockSpec((FC_PAD, FC_PAD), lambda li: (0, 0)),
        ],
        out_specs=pl.BlockSpec((B, FC_PAD), lambda li: (0, 0)),
        scratch_shapes=[pltpu.VMEM((B, FC_IN), jnp.float32)],
        compiler_params=pltpu.CompilerParams(dimension_semantics=("arbitrary",)),
    )(agg, w1_t, w2_t)

    # Pre-cast once so the per-tile scale kernel has no casts.
    att3 = att_full[:, :C].reshape(B, C, 1).astype(event_40C_feature.dtype)

    # --- 2) tiled, pipelined broadcast multiply (no wrapper pad/slice) ---
    hw = H * W
    t_hw = min(tile_hw, _round_up(hw, LANE))     # lane-dense tile (mult. of 128)
    x = event_40C_feature.reshape(B, C, hw)

    out = pl.pallas_call(
        _scale_kernel,
        out_shape=jax.ShapeDtypeStruct((B, C, hw), event_40C_feature.dtype),
        grid=(B, pl.cdiv(hw, t_hw)),             # ragged last block: masked stores
        in_specs=[
            pl.BlockSpec((1, C, t_hw), lambda b, s: (b, 0, s)),
            pl.BlockSpec((1, C, 1), lambda b, s: (b, 0, 0)),
        ],
        out_specs=pl.BlockSpec((1, C, t_hw), lambda b, s: (b, 0, s)),
        compiler_params=pltpu.CompilerParams(
            dimension_semantics=("parallel", "parallel")),
    )(x, att3)

    return out.reshape(B, C, H, W)


if __name__ == "__main__":
    key = jax.random.PRNGKey(0)
    k1, k2, k3, k4 = jax.random.split(key, 4)

    B, C, H, W = 2, 40, 16, 16   # event_c must equal 40 (fc output size)
    L, IN = 8, 512               # aggregated-event sequence length / feature dim

    event_40C_feature = jax.random.normal(k1, (B, C, H, W), jnp.float32)
    agg = jax.random.normal(k2, (B, L, IN), jnp.float32)

    # Deterministic in-script init for the two bias-free Linear layers (torch (out, in)).
    w1 = jax.random.normal(k3, (40, IN), jnp.float32) * 0.05
    w2 = jax.random.normal(k4, (40, 40), jnp.float32) * 0.05

    out = channel_att(event_40C_feature, (agg,), w1, w2)
    out = jax.block_until_ready(out)

    # Pure-JAX reference check of the forward semantics.
    pooled = jnp.mean(agg, axis=1)
    att = jax.nn.sigmoid(jnp.maximum(pooled @ w1.T, 0.0) @ w2.T)
    ref = event_40C_feature * att[:, :, None, None]
    assert jnp.allclose(out, ref, atol=1e-5, rtol=1e-5), "mismatch vs reference"

    print("KERNEL_OK")
</pallas_src>

<mosaic_0001>
module attributes {stable_mosaic.version = 11 : i64} {
  func.func @_fc_kernel(%arg0: i32, %arg1: memref<2x8x512xf32, #tpu.memory_space<vmem>>, %arg2: memref<512x128xf32, #tpu.memory_space<vmem>>, %arg3: memref<128x128xf32, #tpu.memory_space<vmem>>, %arg4: memref<2x128xf32, #tpu.memory_space<vmem>>, %arg5: memref<2x512xf32, #tpu.memory_space<vmem>>) attributes {dimension_semantics = [#tpu.dimension_semantics<arbitrary>], iteration_bounds = array<i64: 1>, scalar_prefetch = 0 : i64, scratch_operands = 1 : i64, tpu.core_type = #tpu.core_type<tc>, window_params = [{transform_indices = @transform_0, window_bounds = array<i64: 2, 8, 512>}, {pipeline_mode = #tpu.pipeline_mode<synchronous>, transform_indices = @transform_1, window_bounds = array<i64: 512, 128>}, {pipeline_mode = #tpu.pipeline_mode<synchronous>, transform_indices = @transform_2, window_bounds = array<i64: 128, 128>}, {pipeline_mode = #tpu.pipeline_mode<synchronous>, transform_indices = @transform_3, window_bounds = array<i64: 2, 128>}]} {
    %c0_i32 = arith.constant 0 : i32
    %0 = arith.cmpi eq, %arg0, %c0_i32 : i32
    %1 = arith.extui %0 : i1 to i32
    %c0_i32_0 = arith.constant 0 : i32
    %2 = arith.cmpi ne, %1, %c0_i32_0 : i32
    scf.if %2 {
      %cst_9 = arith.constant 0.000000e+00 : f32
      %11 = vector.broadcast %cst_9 : f32 to vector<2x512xf32>
      %c0_10 = arith.constant 0 : index
      %c0_11 = arith.constant 0 : index
      %12 = vector.load %arg5[%c0_10, %c0_11] : memref<2x512xf32, #tpu.memory_space<vmem>>, vector<2x512xf32>
      tpu.vector_store %arg5[%c0_10, %c0_11], %11 {strides = array<i32>} : memref<2x512xf32, #tpu.memory_space<vmem>>, vector<2x512xf32>,
    } else {
    }
    %c0 = arith.constant 0 : index
    %c0_1 = arith.constant 0 : index
    %c0_2 = arith.constant 0 : index
    %3 = vector.load %arg1[%c0, %c0_1, %c0_2] : memref<2x8x512xf32, #tpu.memory_space<vmem>>, vector<2x8x512xf32>
    %c0_3 = arith.constant 0 : index
    %c0_4 = arith.constant 0 : index
    %4 = vector.load %arg5[%c0_3, %c0_4] : memref<2x512xf32, #tpu.memory_space<vmem>>, vector<2x512xf32>
    %cst = arith.constant dense<0.000000e+00> : vector<2x512xf32>
    %5 = vector.multi_reduction <add>, %3, %cst [1] : vector<2x8x512xf32> to vector<2x512xf32>
    %6 = arith.addf %4, %5 : vector<2x512xf32>
    %c0_5 = arith.constant 0 : index
    %c0_6 = arith.constant 0 : index
    %7 = vector.load %arg5[%c0_5, %c0_6] : memref<2x512xf32, #tpu.memory_space<vmem>>, vector<2x512xf32>
    tpu.vector_store %arg5[%c0_5, %c0_6], %6 {strides = array<i32>} : memref<2x512xf32, #tpu.memory_space<vmem>>, vector<2x512xf32>,
    %c0_i32_7 = arith.constant 0 : i32
    %8 = arith.cmpi eq, %arg0, %c0_i32_7 : i32
    %9 = arith.extui %8 : i1 to i32
    %c0_i32_8 = arith.constant 0 : i32
    %10 = arith.cmpi ne, %9, %c0_i32_8 : i32
    scf.if %10 {
      %c0_9 = arith.constant 0 : index
      %c0_10 = arith.constant 0 : index
      %11 = vector.load %arg5[%c0_9, %c0_10] : memref<2x512xf32, #tpu.memory_space<vmem>>, vector<2x512xf32>
      %cst_11 = arith.constant 1.250000e-01 : f32
      %12 = vector.broadcast %cst_11 : f32 to vector<2x512xf32>
      %13 = arith.mulf %11, %12 : vector<2x512xf32>
      %c0_12 = arith.constant 0 : index
      %c0_13 = arith.constant 0 : index
      %14 = vector.load %arg2[%c0_12, %c0_13] : memref<512x128xf32, #tpu.memory_space<vmem>>, vector<512x128xf32>
      %cst_14 = arith.constant dense<0.000000e+00> : vector<2x128xf32>
      %15 = tpu.matmul %13, %14, %cst_14 {dimension_numbers = #tpu.dot_dimension_numbers<[1], [0], [0], [1], [0, 0, 1, 1], [], []>} : vector<2x512xf32>, vector<512x128xf32>, vector<2x128xf32> -> vector<2x128xf32>
      %cst_15 = arith.constant 0.000000e+00 : f32
      %16 = vector.broadcast %cst_15 : f32 to vector<2x128xf32>
      %17 = arith.maximumf %15, %16 : vector<2x128xf32>
      %c0_16 = arith.constant 0 : index
      %c0_17 = arith.constant 0 : index
      %18 = vector.load %arg3[%c0_16, %c0_17] : memref<128x128xf32, #tpu.memory_space<vmem>>, vector<128x128xf32>
      %cst_18 = arith.constant dense<0.000000e+00> : vector<2x128xf32>
      %19 = tpu.matmul %17, %18, %cst_18 {dimension_numbers = #tpu.dot_dimension_numbers<[1], [0], [0], [1], [0, 0, 1, 1], [], []>} : vector<2x128xf32>, vector<128x128xf32>, vector<2x128xf32> -> vector<2x128xf32>
      %20 = arith.negf %19 : vector<2x128xf32>
      %21 = math.exp %20 : vector<2x128xf32>
      %cst_19 = arith.constant 1.000000e+00 : f32
      %22 = vector.broadcast %cst_19 : f32 to vector<2x128xf32>
      %23 = arith.addf %22, %21 : vector<2x128xf32>
      %24 = arith.divf %22, %23 : vector<2x128xf32>
      %c0_20 = arith.constant 0 : index
      %c0_21 = arith.constant 0 : index
      %25 = vector.load %arg4[%c0_20, %c0_21] : memref<2x128xf32, #tpu.memory_space<vmem>>, vector<2x128xf32>
      tpu.vector_store %arg4[%c0_20, %c0_21], %24 {strides = array<i32>} : memref<2x128xf32, #tpu.memory_space<vmem>>, vector<2x128xf32>,
    } else {
    }
    return
  }
  func.func @transform_0(%arg0: i32) -> (i32, i32, i32) {
    %c0_i32 = arith.constant 0 : i32
    %c0_i32_0 = arith.constant 0 : i32
    %c0_i32_1 = arith.constant 0 : i32
    return %c0_i32, %arg0, %c0_i32_0 : i32, i32, i32
  }
  func.func @transform_1(%arg0: i32) -> (i32, i32) {
    %c0_i32 = arith.constant 0 : i32
    %c0_i32_0 = arith.constant 0 : i32
    %c0_i32_1 = arith.constant 0 : i32
    return %c0_i32, %c0_i32_0 : i32, i32
  }
  func.func @transform_2(%arg0: i32) -> (i32, i32) {
    %c0_i32 = arith.constant 0 : i32
    %c0_i32_0 = arith.constant 0 : i32
    %c0_i32_1 = arith.constant 0 : i32
    return %c0_i32, %c0_i32_0 : i32, i32
  }
  func.func @transform_3(%arg0: i32) -> (i32, i32) {
    %c0_i32 = arith.constant 0 : i32
    %c0_i32_0 = arith.constant 0 : i32
    %c0_i32_1 = arith.constant 0 : i32
    return %c0_i32, %c0_i32_0 : i32, i32
  }
}

</mosaic_0001>

<bundles_post_ra>
// kernel: tpu_custom_call.1
= control target key start
LH: loop header
LB: loop body
LE: loop exit
PB: predicated region body
PF: predicated region fallthrough
CT: control target
= control target key end

     0   :  { %8 = vsyncpa [#allocation4], 0  ;;  %s554_s0 = inlined_call_operand.hbm [shape: f32[2,8,512], index: 0, kind: input, shape index: {}]   ;;  %s555_s1 = inlined_call_operand.hbm [shape: f32[512,128], index: 1, kind: input, shape index: {}]   ;;  %s556_s2 = inlined_call_operand.hbm [shape: f32[128,128], index: 2, kind: input, shape index: {}]   ;;  %s557_s3 = inlined_call_operand.hbm [shape: f32[2,128], index: 3, kind: output, shape index: {}]  }
   0x1   :  { %9 = vsyncpa [#allocation7], 0  ;;  %s28_s14 = sshll.u32 %s555_s1, 4  ;;  %s29_s14 = int_to_ptr.hbm [resolvable:$true] %s28_s14 }
   0x2   :  { %10 = vsyncpa [#allocation5], 0  ;;  %s512_s15 = smov [#allocation6]   ;;  %s15_s19 = sshll.u32 %s554_s0, 4  ;;  %s16_s19 = int_to_ptr.hbm [resolvable:$true] %s15_s19 }
   0x3   :  { %s30_s16 = sshll.u32 %s512_s15, 4  ;;  %s513_s20 = smov 128   ;;  %s31_s16 = int_to_ptr.vmem [resolvable:$true] %s30_s16 }
   0x4   :  { %s514_s21 = smov 8   ;;  %s515_s22 = smov [#allocation3]  }
   0x5   :  { %36 = dma.hbm_to_vmem [thread:$0]  %s29_s14, 8192, %s31_s16, [#allocation7], %s513_s20, %s513_s20, %s514_s21  }
   0x6   :  { %s17_s23 = sshll.u32 %s515_s22, 4  ;;  %s516_s24 = smov 512   ;;  %s18_s23 = int_to_ptr.vmem [resolvable:$true] %s17_s23 }
   0x7   :  { %s517_s25 = smov 32   ;;  %s41_s27 = sshll.u32 %s556_s2, 4  ;;  %s42_s27 = int_to_ptr.hbm [resolvable:$true] %s41_s27 }
   0x8   :  { %23 = dma.hbm_to_vmem [thread:$0]  %s16_s19, 1024, %s18_s23, [#allocation4], %s516_s24, %s516_s24, %s517_s25  }
   0x9   :  { %s518_s28 = smov [#allocation8]  }
   0xa   :  { %s43_s29 = sshll.u32 %s518_s28, 4  ;;  %s44_s29 = int_to_ptr.vmem [resolvable:$true] %s43_s29 }
   0xb   :  { %49 = dma.hbm_to_vmem [thread:$0]  %s42_s27, 2048, %s44_s29, [#allocation7], %s513_s20, %s513_s20, %s514_s21  }
   0xc   :  { %506 = dma.done.wait [#allocation4], 1024  }
   0xd   :  { %507 = vsyncadd [#allocation4], 4294966272 }
   0xe   :  { %508 = dma.done.wait [#allocation7], 10240  }
   0xf   :  { %509 = vsyncadd [#allocation7], 4294957056  ;;  %v215_v0 = vld [vmem:[#allocation6 + $0x178] sm:$0xff]  ;;  %v214_v1 = vld [vmem:[#allocation6 + $0x170] sm:$0xff]  ;;  %vm138_vm0 = vcmask 1041408   ;;  %vm140_vm1 = vcmask 1045508  }
  0x10   :  { %v231_v2 = vld [vmem:[#allocation6 + $0x1f8] sm:$0xff]  ;;  %282 = vmatpush.msra.mxu2 %v215_v0  ;;  %v213_v5 = vld [vmem:[#allocation6 + $0x168] sm:$0xff]  ;;  %v230_v6 = vld [vmem:[#allocation6 + $0x1f0] sm:$0xff]  ;;  %vm142_vm2 = vcmask 1043456   ;;  %vm152_vm3 = vcmask 1041409   ;;  %vm154_vm4 = vcmask 1043459  }
  0x11   :  { %302 = vmatpush.msra.mxu3 %v231_v2  ;;  %v183_v3 = vld [vmem:[#allocation6 + $0x78] sm:$0xff]  ;;  %v182_v7 = vld [vmem:[#allocation6 + $0x70] sm:$0xff]  ;;  %v229_v9 = vld [vmem:[#allocation6 + $0x1e8] sm:$0xff]  ;;  %vm156_vm5 = vcmask 1045509   ;;  %vm158_vm6 = vcmask 1047559   ;;  %s519_s0 = smov [#allocation9]  }
  0x12   :  { %v199_v4 = vld [vmem:[#allocation6 + $0xf8] sm:$0xff]  ;;  %242 = vmatpush.msra.mxu0 %v183_v3  ;;  %v198_v8 = vld [vmem:[#allocation6 + $0xf0] sm:$0xff]  ;;  %283 = vmatpush.msra.mxu2 %v214_v1  ;;  %v181_v10 = vld [vmem:[#allocation6 + $0x68] sm:$0xff]  ;;  %s384_s2 = sshll.u32 %s519_s0, 4  ;;  %s386_s5 = sshll.u32 %s557_s3, 4  ;;  %s385_s2 = int_to_ptr.vmem [resolvable:$true] %s384_s2  ;;  %s387_s5 = int_to_ptr.hbm [resolvable:$true] %s386_s5 }
  0x13   :  { %262 = vmatpush.msra.mxu1 %v199_v4  ;;  %303 = vmatpush.msra.mxu3 %v230_v6  ;;  %v212_v11 = vld [vmem:[#allocation6 + $0x160] sm:$0xff]  ;;  %v197_v12 = vld [vmem:[#allocation6 + $0xe8] sm:$0xff]  ;;  %v211_v16 = vld [vmem:[#allocation6 + $0x158] sm:$0xff] }
  0x14   :  { %243 = vmatpush.msra.mxu0 %v182_v7  ;;  %v228_v13 = vld [vmem:[#allocation6 + $0x1e0] sm:$0xff]  ;;  %284 = vmatpush.msra.mxu2 %v213_v5  ;;  %v227_v17 = vld [vmem:[#allocation6 + $0x1d8] sm:$0xff]  ;;  %v210_v20 = vld [vmem:[#allocation6 + $0x150] sm:$0xff] }
  0x15   :  { %263 = vmatpush.msra.mxu1 %v198_v8  ;;  %304 = vmatpush.msra.mxu3 %v229_v9  ;;  %v180_v14 = vld [vmem:[#allocation6 + $0x60] sm:$0xff]  ;;  %v179_v18 = vld [vmem:[#allocation6 + $0x58] sm:$0xff]  ;;  %v226_v21 = vld [vmem:[#allocation6 + $0x1d0] sm:$0xff] }
  0x16   :  { %v196_v15 = vld [vmem:[#allocation6 + $0xe0] sm:$0xff]  ;;  %244 = vmatpush.msra.mxu0 %v181_v10  ;;  %285 = vmatpush.msra.mxu2 %v212_v11  ;;  %v195_v19 = vld [vmem:[#allocation6 + $0xd8] sm:$0xff]  ;;  %v178_v22 = vld [vmem:[#allocation6 + $0x50] sm:$0xff] }
  0x17   :  { %264 = vmatpush.msra.mxu1 %v197_v12  ;;  %305 = vmatpush.msra.mxu3 %v228_v13  ;;  %v194_v23 = vld [vmem:[#allocation6 + $0xd0] sm:$0xff]  ;;  %v209_v24 = vld [vmem:[#allocation6 + $0x148] sm:$0xff]  ;;  %v208_v28 = vld [vmem:[#allocation6 + $0x140] sm:$0xff] }
  0x18   :  { %245 = vmatpush.msra.mxu0 %v180_v14  ;;  %286 = vmatpush.msra.mxu2 %v211_v16  ;;  %v225_v25 = vld [vmem:[#allocation6 + $0x1c8] sm:$0xff]  ;;  %v224_v29 = vld [vmem:[#allocation6 + $0x1c0] sm:$0xff]  ;;  %v207_v32 = vld [vmem:[#allocation6 + $0x138] sm:$0xff] }
  0x19   :  { %265 = vmatpush.msra.mxu1 %v196_v15  ;;  %306 = vmatpush.msra.mxu3 %v227_v17  ;;  %v177_v26 = vld [vmem:[#allocation6 + $0x48] sm:$0xff]  ;;  %v176_v30 = vld [vmem:[#allocation6 + $0x40] sm:$0xff]  ;;  %v223_v33 = vld [vmem:[#allocation6 + $0x1b8] sm:$0xff] }
  0x1a   :  { %246 = vmatpush.msra.mxu0 %v179_v18  ;;  %287 = vmatpush.msra.mxu2 %v210_v20  ;;  %v193_v27 = vld [vmem:[#allocation6 + $0xc8] sm:$0xff]  ;;  %v192_v31 = vld [vmem:[#allocation6 + $0xc0] sm:$0xff]  ;;  %v175_v34 = vld [vmem:[#allocation6 + $0x38] sm:$0xff] }
  0x1b   :  { %266 = vmatpush.msra.mxu1 %v195_v19  ;;  %307 = vmatpush.msra.mxu3 %v226_v21  ;;  %v191_v35 = vld [vmem:[#allocation6 + $0xb8] sm:$0xff]  ;;  %v206_v36 = vld [vmem:[#allocation6 + $0x130] sm:$0xff]  ;;  %v205_v37 = vld [vmem:[#allocation6 + $0x128] sm:$0xff] }
  0x1c   :  { %247 = vmatpush.msra.mxu0 %v178_v22  ;;  %288 = vmatpush.msra.mxu2 %v209_v24  ;;  %v222_v38 = vld [vmem:[#allocation6 + $0x1b0] sm:$0xff]  ;;  %v221_v41 = vld [vmem:[#allocation6 + $0x1a8] sm:$0xff]  ;;  %v204_v42 = vld [vmem:[#allocation6 + $0x120] sm:$0xff] }
  0x1d   :  { %267 = vmatpush.msra.mxu1 %v194_v23  ;;  %308 = vmatpush.msra.mxu3 %v225_v25  ;;  %v174_v39 = vld [vmem:[#allocation6 + $0x30] sm:$0xff]  ;;  %v173_v43 = vld [vmem:[#allocation6 + $0x28] sm:$0xff]  ;;  %v220_v45 = vld [vmem:[#allocation6 + $0x1a0] sm:$0xff] }
  0x1e   :  { %248 = vmatpush.msra.mxu0 %v177_v26  ;;  %289 = vmatpush.msra.mxu2 %v208_v28  ;;  %v190_v40 = vld [vmem:[#allocation6 + $0xb0] sm:$0xff]  ;;  %v189_v44 = vld [vmem:[#allocation6 + $0xa8] sm:$0xff]  ;;  %v172_v46 = vld [vmem:[#allocation6 + $0x20] sm:$0xff] }
  0x1f   :  { %268 = vmatpush.msra.mxu1 %v193_v27  ;;  %309 = vmatpush.msra.mxu3 %v224_v29  ;;  %v188_v47 = vld [vmem:[#allocation6 + $0xa0] sm:$0xff]  ;;  %v68_v49 = vld [vmem:[#allocation3 + $0x8] sm:$0xff]  ;;  %v69_v50 = vld [vmem:[#allocation3 + $0x10] sm:$0xff] }
  0x20   :  { %249 = vmatpush.msra.mxu0 %v176_v30  ;;  %290 = vmatpush.msra.mxu2 %v207_v32  ;;  %v67_v48 = vld [vmem:[#allocation3] sm:$0xff]  ;;  %v70_v51 = vld [vmem:[#allocation3 + $0x18] sm:$0xff]  ;;  %v72_v54 = vld [vmem:[#allocation3 + $0x28] sm:$0xff]  ;;  %v82_v56 = vrot.slane %v68_v49, 4  ;;  %v88_v57 = vrot.slane %v69_v50, 4 }
  0x21   :  { %269 = vmatpush.msra.mxu1 %v192_v31  ;;  %310 = vmatpush.msra.mxu3 %v223_v33  ;;  %v76_v52 = vrot.slane %v67_v48, 4  ;;  %v71_v53 = vld [vmem:[#allocation3 + $0x20] sm:$0xff]  ;;  %v73_v55 = vld [vmem:[#allocation3 + $0x30] sm:$0xff]  ;;  %v94_v58 = vrot.slane %v70_v51, 4  ;;  %v203_v59 = vld [vmem:[#allocation6 + $0x118] sm:$0xff]  ;;  %v106_v0 = vrot.slane %v72_v54, 4 }
  0x22   :  { %250 = vmatpush.msra.mxu0 %v175_v34  ;;  %291 = vmatpush.msra.mxu2 %v206_v36  ;;  %v219_v60 = vld [vmem:[#allocation6 + $0x198] sm:$0xff]  ;;  %v100_v63 = vrot.slane %v71_v53, 4  ;;  %v112_v1 = vrot.slane %v73_v55, 4  ;;  %v83_v4 = vadd.f32 %v82_v56, %v68_v49  ;;  %v89_v5 = vadd.f32 %v88_v57, %v69_v50  ;;  %v202_v8 = vld [vmem:[#allocation6 + $0x110] sm:$0xff]  ;;  %v201_v20 = vld [vmem:[#allocation6 + $0x108] sm:$0xff] }
  0x23   :  { %270 = vmatpush.msra.mxu1 %v191_v35  ;;  %311 = vmatpush.msra.mxu3 %v222_v38  ;;  %v74_v61 = vld [vmem:[#allocation3 + $0x38] sm:$0xff]  ;;  %v77_v62 = vadd.f32 %v76_v52, %v67_v48  ;;  %v95_v6 = vadd.f32 %v94_v58, %v70_v51  ;;  %v218_v9 = vld [vmem:[#allocation6 + $0x190] sm:$0xff]  ;;  %v107_v12 = vadd.f32 %v106_v0, %v72_v54  ;;  %v217_v21 = vld [vmem:[#allocation6 + $0x188] sm:$0xff] }
  0x24   :  { %251 = vmatpush.msra.mxu0 %v174_v39  ;;  %292 = vmatpush.msra.mxu2 %v205_v37  ;;  %v171_v2 = vld [vmem:[#allocation6 + $0x18] sm:$0xff]  ;;  %v118_v7 = vrot.slane %v74_v61, 4  ;;  %v101_v11 = vadd.f32 %v100_v63, %v71_v53  ;;  %v113_v13 = vadd.f32 %v112_v1, %v73_v55  ;;  %v170_v14 = vld [vmem:[#allocation6 + $0x10] sm:$0xff]  ;;  %v84_v16 = vrot.slane %v83_v4, 2  ;;  %v169_v30 = vld [vmem:[#allocation6 + $0x8] sm:$0xff] }
  0x25   :  { %271 = vmatpush.msra.mxu1 %v190_v40  ;;  %312 = vmatpush.msra.mxu3 %v221_v41  ;;  %v187_v3 = vld [vmem:[#allocation6 + $0x98] sm:$0xff]  ;;  %v78_v10 = vrot.slane %v77_v62, 2  ;;  %v186_v15 = vld [vmem:[#allocation6 + $0x90] sm:$0xff]  ;;  %v90_v17 = vrot.slane %v89_v5, 2  ;;  %v96_v18 = vrot.slane %v95_v6, 2  ;;  %v108_v24 = vrot.slane %v107_v12, 2 }
  0x26   :  { %252 = vmatpush.msra.mxu0 %v173_v43  ;;  %293 = vmatpush.msra.mxu2 %v204_v42  ;;  %v119_v19 = vadd.f32 %v118_v7, %v74_v61  ;;  %v102_v23 = vrot.slane %v101_v11, 2  ;;  %v114_v25 = vrot.slane %v113_v13, 2  ;;  %v85_v26 = vadd.f32 %v84_v16, %v83_v4  ;;  %v185_v31 = vld [vmem:[#allocation6 + $0x88] sm:$0xff]  ;;  %v200_v32 = vld [vmem:[#allocation6 + $0x100] sm:$0xff]  ;;  %v338_v48 = vld [vmem:[#allocation8 + $0x78] sm:$0xff] }
  0x27   :  { %272 = vmatpush.msra.mxu1 %v189_v44  ;;  %313 = vmatpush.msra.mxu3 %v220_v45  ;;  %v79_v22 = vadd.f32 %v78_v10, %v77_v62  ;;  %v91_v27 = vadd.f32 %v90_v17, %v89_v5  ;;  %v97_v28 = vadd.f32 %v96_v18, %v95_v6  ;;  %v216_v37 = vld [vmem:[#allocation6 + $0x180] sm:$0xff]  ;;  %v337_v56 = vld [vmem:[#allocation8 + $0x70] sm:$0xff]  ;;  %v336_v63 = vld [vmem:[#allocation8 + $0x68] sm:$0xff] }
  0x28   :  { %253 = vmatpush.msra.mxu0 %v172_v46  ;;  %294 = vmatpush.msra.mxu2 %v203_v59  ;;  %v120_v29 = vrot.slane %v119_v19, 2  ;;  %v103_v34 = vadd.f32 %v102_v23, %v101_v11  ;;  %v109_v35 = vadd.f32 %v108_v24, %v107_v12  ;;  %v115_v36 = vadd.f32 %v114_v25, %v113_v13  ;;  %v168_v42 = vld [vmem:[#allocation6] sm:$0xff]  ;;  %v333_v10 = vld [vmem:[#allocation8 + $0x50] sm:$0xff]  ;;  %v332_v13 = vld [vmem:[#allocation8 + $0x48] sm:$0xff] }
  0x29   :  { %273 = vmatpush.msra.mxu1 %v188_v47  ;;  %314 = vmatpush.msra.mxu3 %v219_v60  ;;  %v80_v33 = vrot.slane %v79_v22, 1  ;;  %v86_v38 = vrot.slane %v85_v26, 1  ;;  %v92_v39 = vrot.slane %v91_v27, 1  ;;  %v98_v40 = vrot.slane %v97_v28, 1  ;;  %v184_v43 = vld [vmem:[#allocation6 + $0x80] sm:$0xff]  ;;  %v330_v18 = vld [vmem:[#allocation8 + $0x38] sm:$0xff] }
  0x2a   :  { %254 = vmatpush.msra.mxu0 %v171_v2  ;;  %295 = vmatpush.msra.mxu2 %v202_v8  ;;  %v121_v41 = vadd.f32 %v120_v29, %v119_v19  ;;  %v104_v45 = vrot.slane %v103_v34, 1  ;;  %v110_v46 = vrot.slane %v109_v35, 1  ;;  %v116_v47 = vrot.slane %v115_v36, 1  ;;  %v335_v4 = vld [vmem:[#allocation8 + $0x60] sm:$0xff]  ;;  %v334_v8 = vld [vmem:[#allocation8 + $0x58] sm:$0xff]  ;;  %v329_v19 = vld [vmem:[#allocation8 + $0x30] sm:$0xff] }
  0x2b   :  { %274 = vmatpush.msra.mxu1 %v187_v3  ;;  %315 = vmatpush.msra.mxu3 %v218_v9  ;;  %v81_v44 = vadd.f32 %v80_v33, %v79_v22  ;;  %v87_v49 = vadd.f32 %v86_v38, %v85_v26  ;;  %v93_v50 = vadd.f32 %v92_v39, %v91_v27  ;;  %v331_v16 = vld [vmem:[#allocation8 + $0x40] sm:$0xff]  ;;  %v326_v26 = vld [vmem:[#allocation8 + $0x18] sm:$0xff]  ;;  %v325_v27 = vld [vmem:[#allocation8 + $0x10] sm:$0xff] }
  0x2c   :  { %255 = vmatpush.msra.mxu0 %v170_v14  ;;  %296 = vmatpush.msra.mxu2 %v201_v20  ;;  %v99_v51 = vadd.f32 %v98_v40, %v97_v28  ;;  %v122_v52 = vrot.slane %v121_v41, 1  ;;  %v105_v53 = vadd.f32 %v104_v45, %v103_v34  ;;  %v111_v54 = vadd.f32 %v110_v46, %v109_v35  ;;  %v328_v20 = vld [vmem:[#allocation8 + $0x28] sm:$0xff]  ;;  %v327_v25 = vld [vmem:[#allocation8 + $0x20] sm:$0xff] }
  0x2d   :  { %275 = vmatpush.msra.mxu1 %v186_v15  ;;  %316 = vmatpush.msra.mxu3 %v217_v21  ;;  %v117_v55 = vadd.f32 %v116_v47, %v115_v36  ;;  %v132_v58 = vrot.slane %v87_v49, 6  ;;  %v133_v59 = vrot.slane %v93_v50, 4  ;;  %v324_v28 = vld [vmem:[#allocation8 + $0x8] sm:$0xff]  ;;  %v323_v29 = vld [vmem:[#allocation8] sm:$0xff] }
  0x2e   :  { %256 = vmatpush.msra.mxu0 %v169_v30  ;;  %297 = vmatpush.msra.mxu2 %v200_v32  ;;  %v123_v57 = vadd.f32 %v122_v52, %v121_v41  ;;  %v134_v60 = vrot.slane %v99_v51, 2  ;;  %v135_v61 = vrot.slane %v111_v54, 6 }
  0x2f   :  { %276 = vmatpush.msra.mxu1 %v185_v31  ;;  %317 = vmatpush.msra.mxu3 %v216_v37  ;;  %v136_v62 = vrot.slane %v117_v55, 4  ;;  %v139_v1 = vsel %vm138_vm0, %v81_v44, %v132_v58 }
  0x30   :  { %257 = vmatpush.msra.mxu0 %v168_v42  ;;  %v137_v0 = vrot.slane %v123_v57, 2  ;;  %v141_v2 = vsel %vm140_vm1, %v133_v59, %v134_v60  ;;  %v144_v3 = vsel %vm138_vm0, %v105_v53, %v135_v61 }
  0x31   :  { %277 = vmatpush.msra.mxu1 %v184_v43  ;;  %v143_v6 = vsel %vm142_vm2, %v139_v1, %v141_v2 }
  0x32   :  { %339 = vmatpush.msrb.mxu0 %v338_v48  ;;  %v145_v5 = vsel %vm140_vm1, %v136_v62, %v137_v0 }
  0x33   :  { %v146_v7 = vsel %vm142_vm2, %v144_v3, %v145_v5 }
  0x34   :  { %340 = vmatpush.msrb.mxu0 %v337_v56  ;;  %v151_v9 = vrot.slane %v146_v7, 7 }
  0x36   :  { %341 = vmatpush.msrb.mxu0 %v336_v63  ;;  %v153_v11 = vsel %vm152_vm3, %v151_v9, %v143_v6 }
  0x37   :  { %v155_v12 = vsel %vm154_vm4, %v151_v9, %v153_v11 }
  0x38   :  { %342 = vmatpush.msrb.mxu0 %v335_v4  ;;  %v157_v14 = vsel %vm156_vm5, %v151_v9, %v155_v12 }
  0x39   :  { %v159_v15 = vsel %vm158_vm6, %v151_v9, %v157_v14 }
  0x3a   :  { %343 = vmatpush.msrb.mxu0 %v334_v8  ;;  %v167_v17 = vmul.f32 0.125, %v159_v15 }
  0x3c   :  { %344 = vmatpush.msrb.mxu0 %v333_v10  ;;  %233 = vst [vmem:[#allocation1] ss:$4 sm:$0xff] %v167_v17 }
  0x3e   :  { %345 = vmatpush.msrb.mxu0 %v332_v13 }
  0x40   :  { %346 = vmatpush.msrb.mxu0 %v331_v16 }
  0x42   :  { %347 = vmatpush.msrb.mxu0 %v330_v18 }
  0x43   :  { %v236_v21 = vld.sshfl [vmem:[#allocation1 + $0x10] sm:$0xff pattern:$0x73625140]  ;;  %v237_v22 = vld.sshfl [vmem:[#allocation1 + $0x18] sm:$0xff pattern:$0x73625140] }
  0x44   :  { %348 = vmatpush.msrb.mxu0 %v329_v19  ;;  %298 = vmatmul.f32.vlgmr.msra.gmra.mxu2 %v236_v21  ;;  %v234_v23 = vld.sshfl [vmem:[#allocation1] sm:$0xff pattern:$0x73625140]  ;;  %v235_v24 = vld.sshfl [vmem:[#allocation1 + $0x8] sm:$0xff pattern:$0x73625140] }
  0x45   :  { %318 = vmatmul.f32.vlgmr.msra.gmra.mxu3 %v237_v22  ;;  %258 = vmatmul.f32.vlgmr.msra.gmra.mxu0 %v234_v23 }
  0x46   :  { %349 = vmatpush.msrb.mxu0 %v328_v20  ;;  %278 = vmatmul.f32.vlgmr.msra.gmra.mxu1 %v235_v24 }
  0x48   :  { %350 = vmatpush.msrb.mxu0 %v327_v25 }
  0x4a   :  { %351 = vmatpush.msrb.mxu0 %v326_v26 }
  0x4c   :  { %352 = vmatpush.msrb.mxu0 %v325_v27 }
  0x4e   :  { %353 = vmatpush.msrb.mxu0 %v324_v28 }
  0x50   :  { %354 = vmatpush.msrb.mxu0 %v323_v29 }
  0xc2   :  { %v259_v30 = vpop.f32.mrf.mxu0 }
  0xc3   :  { %v279_v31 = vpop.f32.mrf.mxu1 }
  0xc4   :  { %v280_v32 = vadd.f32 %v279_v31, %v259_v30 }
  0xc7   :  { %v299_v33 = vpop.f32.mrf.mxu2 }
  0xc8   :  { %v319_v34 = vpop.f32.mrf.mxu3  ;;  %v300_v35 = vadd.f32 %v299_v33, %v280_v32 }
  0xca   :  { %v320_v36 = vadd.f32 %v319_v34, %v300_v35 }
  0xcc   :  { %v322_v37 = vmax.f32 %v320_v36, 0.0 }
  0xce   :  { %355 = vmatmul.f32.vlgmr.msrb.gmra.mxu0 %v322_v37 }
 0x14b   :  { %v356_v38 = vpop.f32.mrf.mxu0 }
 0x14c   :  { %v397_v39 = vmul.f32 -1.442695, %v356_v38 }
 0x14e   :  { %406 = vpow2.f32 %v397_v39 }
 0x154   :  { %v407_v40 = vpop.eup %406 }
 0x155   :  { %v362_v41 = vadd.f32 1.0, %v407_v40 }
 0x157   :  { %408 = vrcp.f32 %v362_v41  ;;  %v374_v45 = vand.u32 2147483648, %v362_v41  ;;  %v372_v47 = vand.u32 2147483647, %v362_v41  ;;  %vm368_vm8 = vweird.f32 %v362_v41 }
 0x159   :  { %v375_v49 = vor.u32 1.1754944e-38, %v374_v45  ;;  %vm373_vm10 = vcmp.eq.f32.partialorder %v372_v47, 8.507059e+37 }
 0x15d   :  { %v409_v42 = vpop.eup %408 }
 0x15e   :  { %v364_v43 = vmul.f32 %v409_v42, %v362_v41  ;;  %vm369_vm7 = vweird.f32 %v409_v42 }
 0x15f   :  { %vm370_vm9 = vmor %vm368_vm8, %vm369_vm7 }
 0x160   :  { %v365_v44 = vsub.f32 1.0, %v364_v43 }
 0x162   :  { %v366_v46 = vmul.f32 %v409_v42, %v365_v44 }
 0x164   :  { %v367_v48 = vadd.f32 %v409_v42, %v366_v46 }
 0x166   :  { %v371_v50 = vsel %vm370_vm9, %v409_v42, %v367_v48 }
 0x167   :  { %v376_v51 = vsel %vm373_vm10, %v375_v49, %v371_v50 }
 0x168   :  { %378 = vst [vmem:[#allocation9] sm:$0x3] %v376_v51 }
 0x169   :  { %389 = dma.vmem_to_hbm [thread:$0]  %s385_s2, 32, %s387_s5, [#allocation5]  }
 0x16a   :  { %510 = dma.done.wait [#allocation5], 32  }
 0x16b   :  { %511 = vsyncadd [#allocation5], 4294967264 }
 0x16c   :  { %394 = vsyncpa [#allocation4], 1 }
 0x16d   :  { %395 = vsyncpa [#allocation7], 1 }
 0x16e   :  { %396 = vsyncpa [#allocation5], 1 }

</bundles_post_ra>
